<compile_context>
chip_gen: v7x
topology: tpu7x:2x2x1
jax: 0.10.0
libtpu: 0.0.40
codegen_flags: <defaults>
</compile_context>

<pallas_src>
import jax
import jax.numpy as jnp
from jax.experimental import pallas as pl
from jax.experimental.pallas import tpu as pltpu


def _round_up(x, m):
    return ((x + m - 1) // m) * m


def _critic_kernel(x_ref, w1_ref, b1_ref, w2_ref, b2_ref, w3r_ref, b3_ref, out_ref):
    w1 = w1_ref[...]
    w2 = w2_ref[...]
    x = x_ref[...].astype(w1.dtype)

    h1 = jnp.tanh(
        jnp.dot(x, w1, preferred_element_type=jnp.float32) + b1_ref[...]
    )
    h2 = jnp.tanh(
        jnp.dot(h1.astype(w2.dtype), w2, preferred_element_type=jnp.float32)
        + b2_ref[...]
    )
    # Output layer has out_features == 1: an MXU matmul would use 1/128..1/256
    # of the output lanes.  Do it as a VPU multiply + XLU lane reduction
    # against the (1, h2) transposed weight row instead.  The `- 1` from
    # forward() is already folded into b3 on the host.
    v = jnp.sum(h2 * w3r_ref[...], axis=-1, keepdims=True) + b3_ref[...]
    out_ref[...] = v.astype(out_ref.dtype)


def mlp_critic_forward(obs, params, *, tile_b=1024, matmul_dtype=None):
    """Runs the MLPCritic forward pass.

    obs:    (B, obs_dim) float32
    params: dict with w1 (obs_dim,h1), b1 (1,h1), w2 (h1,h2), b2 (1,h2),
            w3 (h2,1), b3 (1,1)
    tile_b: batch rows per grid step (rounded to a multiple of 8 sublanes).
    matmul_dtype: optional narrower dtype (e.g. jnp.bfloat16) for the hidden
            matmul operands on v6e/v7x; accumulation stays f32.
    returns: squeeze(v_net(obs) - 1)  -> shape (B,) for B > 1, 0-d for B == 1
    """
    B, obs_dim = obs.shape
    w1, b1 = params["w1"], params["b1"]
    w2, b2 = params["w2"], params["b2"]
    w3, b3 = params["w3"], params["b3"]
    h1_dim, h2_dim = w1.shape[1], w2.shape[1]

    if matmul_dtype is not None:
        w1 = w1.astype(matmul_dtype)
        w2 = w2.astype(matmul_dtype)

    # Fold forward()'s `- 1` into the final bias (host-side, free).
    b3_fused = (b3 - 1.0).astype(jnp.float32)
    # Present the (h2, 1) output weight as a lane-resident (1, h2) row.
    w3_row = w3.reshape(1, h2_dim)

    # Batch tile: multiple of 8 sublanes, no bigger than the (padded) batch.
    tb = min(int(tile_b), _round_up(B, 8))
    tb = max(8, (tb // 8) * 8)
    B_pad = _round_up(B, tb)
    if B_pad != B:
        obs = jnp.pad(obs, ((0, B_pad - B), (0, 0)))
    grid = (B_pad // tb,)

    # Weights/biases: full block, constant index_map -> resident across steps.
    const2 = lambda a: pl.BlockSpec(a.shape, lambda i: (0, 0))

    v = pl.pallas_call(
        _critic_kernel,
        out_shape=jax.ShapeDtypeStruct((B_pad, 1), jnp.float32),
        grid=grid,
        in_specs=[
            pl.BlockSpec((tb, obs_dim), lambda i: (i, 0)),
            const2(w1), const2(b1),
            const2(w2), const2(b2),
            const2(w3_row), const2(b3_fused),
        ],
        out_specs=pl.BlockSpec((tb, 1), lambda i: (i, 0)),
        compiler_params=pltpu.CompilerParams(
            dimension_semantics=("parallel",)
        ),
    )(obs, w1, b1, w2, b2, w3_row, b3_fused)

    v = v[:B]
    # torch.squeeze: drop all size-1 dims (glue, outside the kernel).
    return jnp.squeeze(v)


def init_params(key, obs_dim, hidden_sizes):
    """Deterministic synthetic init matching nn.Linear shapes (weights stored
    transposed as (in, out))."""
    sizes = [obs_dim] + list(hidden_sizes) + [1]
    params = {}
    for j in range(len(sizes) - 1):
        key, kw, kb = jax.random.split(key, 3)
        fan_in = sizes[j]
        bound = 1.0 / jnp.sqrt(fan_in)
        params[f"w{j + 1}"] = jax.random.uniform(
            kw, (sizes[j], sizes[j + 1]), jnp.float32, -bound, bound
        )
        params[f"b{j + 1}"] = jax.random.uniform(
            kb, (1, sizes[j + 1]), jnp.float32, -bound, bound
        )
    return params


def reference_forward(obs, params):
    h = obs
    n_layers = len(params) // 2
    for j in range(1, n_layers + 1):
        h = h @ params[f"w{j}"] + params[f"b{j}"]
        if j < n_layers:
            h = jnp.tanh(h)
    return jnp.squeeze(h - 1.0)


if __name__ == "__main__":
    key = jax.random.PRNGKey(0)
    obs_dim = 16
    hidden_sizes = (32, 32)
    params = init_params(key, obs_dim, hidden_sizes)

    # Case 1: small batch, single grid step (tile clamps to 8 rows).
    B = 8
    key, k_obs = jax.random.split(key)
    obs = jax.random.normal(k_obs, (B, obs_dim), dtype=jnp.float32)
    out = jax.block_until_ready(mlp_critic_forward(obs, params))
    ref = reference_forward(obs, params)
    assert out.shape == ref.shape == (B,)
    assert jnp.allclose(out, ref, atol=1e-5, rtol=1e-5)

    # Case 2: batch not a multiple of the tile -> exercises padding + grid > 1.
    B2 = 37
    key, k_obs2 = jax.random.split(key)
    obs2 = jax.random.normal(k_obs2, (B2, obs_dim), dtype=jnp.float32)
    out2 = jax.block_until_ready(mlp_critic_forward(obs2, params, tile_b=16))
    ref2 = reference_forward(obs2, params)
    assert out2.shape == ref2.shape == (B2,)
    assert jnp.allclose(out2, ref2, atol=1e-5, rtol=1e-5)

    print("KERNEL_OK")
</pallas_src>

<mosaic_0001>
module attributes {stable_mosaic.version = 11 : i64} {
  func.func @_critic_kernel(%arg0: i32, %arg1: memref<8x16xf32, #tpu.memory_space<vmem>>, %arg2: memref<16x32xf32, #tpu.memory_space<vmem>>, %arg3: memref<1x32xf32, #tpu.memory_space<vmem>>, %arg4: memref<32x32xf32, #tpu.memory_space<vmem>>, %arg5: memref<1x32xf32, #tpu.memory_space<vmem>>, %arg6: memref<1x32xf32, #tpu.memory_space<vmem>>, %arg7: memref<1x1xf32, #tpu.memory_space<vmem>>, %arg8: memref<8x1xf32, #tpu.memory_space<vmem>>) attributes {dimension_semantics = [#tpu.dimension_semantics<parallel>], iteration_bounds = array<i64: 1>, scalar_prefetch = 0 : i64, scratch_operands = 0 : i64, tpu.core_type = #tpu.core_type<tc>, window_params = [{transform_indices = @transform_0, window_bounds = array<i64: 8, 16>}, {pipeline_mode = #tpu.pipeline_mode<synchronous>, transform_indices = @transform_1, window_bounds = array<i64: 16, 32>}, {pipeline_mode = #tpu.pipeline_mode<synchronous>, transform_indices = @transform_2, window_bounds = array<i64: 1, 32>}, {pipeline_mode = #tpu.pipeline_mode<synchronous>, transform_indices = @transform_3, window_bounds = array<i64: 32, 32>}, {pipeline_mode = #tpu.pipeline_mode<synchronous>, transform_indices = @transform_4, window_bounds = array<i64: 1, 32>}, {pipeline_mode = #tpu.pipeline_mode<synchronous>, transform_indices = @transform_5, window_bounds = array<i64: 1, 32>}, {pipeline_mode = #tpu.pipeline_mode<synchronous>, transform_indices = @transform_6, window_bounds = array<i64: 1, 1>}, {transform_indices = @transform_7, window_bounds = array<i64: 8, 1>}]} {
    %c0 = arith.constant 0 : index
    %c0_0 = arith.constant 0 : index
    %0 = vector.load %arg2[%c0, %c0_0] : memref<16x32xf32, #tpu.memory_space<vmem>>, vector<16x32xf32>
    %c0_1 = arith.constant 0 : index
    %c0_2 = arith.constant 0 : index
    %1 = vector.load %arg4[%c0_1, %c0_2] : memref<32x32xf32, #tpu.memory_space<vmem>>, vector<32x32xf32>
    %c0_3 = arith.constant 0 : index
    %c0_4 = arith.constant 0 : index
    %2 = vector.load %arg1[%c0_3, %c0_4] : memref<8x16xf32, #tpu.memory_space<vmem>>, vector<8x16xf32>
    %cst = arith.constant dense<0.000000e+00> : vector<8x32xf32>
    %3 = tpu.matmul %2, %0, %cst {dimension_numbers = #tpu.dot_dimension_numbers<[1], [0], [0], [1], [0, 0, 1, 1], [], []>} : vector<8x16xf32>, vector<16x32xf32>, vector<8x32xf32> -> vector<8x32xf32>
    %c0_5 = arith.constant 0 : index
    %c0_6 = arith.constant 0 : index
    %4 = vector.load %arg3[%c0_5, %c0_6] : memref<1x32xf32, #tpu.memory_space<vmem>>, vector<1x32xf32>
    %5 = vector.broadcast %4 : vector<1x32xf32> to vector<8x32xf32>
    %6 = arith.addf %3, %5 : vector<8x32xf32>
    %7 = math.tanh %6 : vector<8x32xf32>
    %cst_7 = arith.constant dense<0.000000e+00> : vector<8x32xf32>
    %8 = tpu.matmul %7, %1, %cst_7 {dimension_numbers = #tpu.dot_dimension_numbers<[1], [0], [0], [1], [0, 0, 1, 1], [], []>} : vector<8x32xf32>, vector<32x32xf32>, vector<8x32xf32> -> vector<8x32xf32>
    %c0_8 = arith.constant 0 : index
    %c0_9 = arith.constant 0 : index
    %9 = vector.load %arg5[%c0_8, %c0_9] : memref<1x32xf32, #tpu.memory_space<vmem>>, vector<1x32xf32>
    %10 = vector.broadcast %9 : vector<1x32xf32> to vector<8x32xf32>
    %11 = arith.addf %8, %10 : vector<8x32xf32>
    %12 = math.tanh %11 : vector<8x32xf32>
    %c0_10 = arith.constant 0 : index
    %c0_11 = arith.constant 0 : index
    %13 = vector.load %arg6[%c0_10, %c0_11] : memref<1x32xf32, #tpu.memory_space<vmem>>, vector<1x32xf32>
    %14 = vector.broadcast %13 : vector<1x32xf32> to vector<8x32xf32>
    %15 = arith.mulf %12, %14 : vector<8x32xf32>
    %cst_12 = arith.constant dense<0.000000e+00> : vector<8xf32>
    %16 = vector.multi_reduction <add>, %15, %cst_12 [1] : vector<8x32xf32> to vector<8xf32>
    %17 = vector.shape_cast %16 : vector<8xf32> to vector<8x1xf32>
    %c0_13 = arith.constant 0 : index
    %c0_14 = arith.constant 0 : index
    %18 = vector.load %arg7[%c0_13, %c0_14] : memref<1x1xf32, #tpu.memory_space<vmem>>, vector<1x1xf32>
    %19 = vector.broadcast %18 : vector<1x1xf32> to vector<8x1xf32>
    %20 = arith.addf %17, %19 : vector<8x1xf32>
    %c0_15 = arith.constant 0 : index
    %c0_16 = arith.constant 0 : index
    %21 = vector.load %arg8[%c0_15, %c0_16] : memref<8x1xf32, #tpu.memory_space<vmem>>, vector<8x1xf32>
    tpu.vector_store %arg8[%c0_15, %c0_16], %20 {strides = array<i32>} : memref<8x1xf32, #tpu.memory_space<vmem>>, vector<8x1xf32>,
    return
  }
  func.func @transform_0(%arg0: i32) -> (i32, i32) {
    %c0_i32 = arith.constant 0 : i32
    %c0_i32_0 = arith.constant 0 : i32
    return %arg0, %c0_i32 : i32, i32
  }
  func.func @transform_1(%arg0: i32) -> (i32, i32) {
    %c0_i32 = arith.constant 0 : i32
    %c0_i32_0 = arith.constant 0 : i32
    %c0_i32_1 = arith.constant 0 : i32
    return %c0_i32, %c0_i32_0 : i32, i32
  }
  func.func @transform_2(%arg0: i32) -> (i32, i32) {
    %c0_i32 = arith.constant 0 : i32
    %c0_i32_0 = arith.constant 0 : i32
    %c0_i32_1 = arith.constant 0 : i32
    return %c0_i32, %c0_i32_0 : i32, i32
  }
  func.func @transform_3(%arg0: i32) -> (i32, i32) {
    %c0_i32 = arith.constant 0 : i32
    %c0_i32_0 = arith.constant 0 : i32
    %c0_i32_1 = arith.constant 0 : i32
    return %c0_i32, %c0_i32_0 : i32, i32
  }
  func.func @transform_4(%arg0: i32) -> (i32, i32) {
    %c0_i32 = arith.constant 0 : i32
    %c0_i32_0 = arith.constant 0 : i32
    %c0_i32_1 = arith.constant 0 : i32
    return %c0_i32, %c0_i32_0 : i32, i32
  }
  func.func @transform_5(%arg0: i32) -> (i32, i32) {
    %c0_i32 = arith.constant 0 : i32
    %c0_i32_0 = arith.constant 0 : i32
    %c0_i32_1 = arith.constant 0 : i32
    return %c0_i32, %c0_i32_0 : i32, i32
  }
  func.func @transform_6(%arg0: i32) -> (i32, i32) {
    %c0_i32 = arith.constant 0 : i32
    %c0_i32_0 = arith.constant 0 : i32
    %c0_i32_1 = arith.constant 0 : i32
    return %c0_i32, %c0_i32_0 : i32, i32
  }
  func.func @transform_7(%arg0: i32) -> (i32, i32) {
    %c0_i32 = arith.constant 0 : i32
    %c0_i32_0 = arith.constant 0 : i32
    return %arg0, %c0_i32 : i32, i32
  }
}

</mosaic_0001>

<bundles_post_ra>
// kernel: tpu_custom_call.1
= control target key start
LH: loop header
LB: loop body
LE: loop exit
PB: predicated region body
PF: predicated region fallthrough
CT: control target
= control target key end

     0   :  { %s493_s0 = inlined_call_operand.hbm [shape: f32[8,16], index: 0, kind: input, shape index: {}]   ;;  %s494_s1 = inlined_call_operand.hbm [shape: f32[16,32], index: 1, kind: input, shape index: {}]   ;;  %s495_s2 = inlined_call_operand.vmem [shape: f32[1,32], index: 2, kind: input, shape index: {}]   ;;  %s496_s3 = inlined_call_operand.hbm [shape: f32[32,32], index: 3, kind: input, shape index: {}]   ;;  %s497_s4 = inlined_call_operand.vmem [shape: f32[1,32], index: 4, kind: input, shape index: {}]   ;;  %s498_s5 = inlined_call_operand.vmem [shape: f32[1,32], index: 5, kind: input, shape index: {}]   ;;  %s499_s6 = inlined_call_operand.<no memory space> [shape: f32[1,1], index: 6, kind: input, shape index: {}]   ;;  %s500_s7 = inlined_call_operand.vmem [shape: f32[8,1], index: 7, kind: output, shape index: {}]  }
   0x1   :  { %v12_v0 = vstv %s499_s6 }
   0x2   :  { %13 = vst [vmem:[#allocation2] sm:$0x1] %v12_v0 }
   0x3   :  { %14 = vsyncpa [#allocation4], 0 }
   0x4   :  { %15 = vsyncpa [#allocation6], 0  ;;  %s388_s26 = smov [#allocation5]   ;;  %s318_s30 = scalar_lea.hbm %s494_s1, 256 }
   0x5   :  { %s31_s27 = sshll.u32 %s388_s26, 4  ;;  %p319_p0 = scmp.ne.s32.totalorder %s494_s1, %s318_s30  ;;  %s32_s27 = int_to_ptr.vmem [resolvable:$true] %s31_s27 }
   0x6   :  { %p322_p1 = scmp.lt.u32.totalorder %s318_s30, %s494_s1 }
   0x8   :  { %p324_p2 = pnand %p322_p1, %p319_p0 }
   0xa   :  { %327 = shalt.err (!%p324_p2)
}
   0xb   :  { %s328_s6 = scalar_lea.vmem %s32_s27, 256  ;;  %p333_p4 = scmp.lt.s32.totalorder %s32_s27, %s32_s27 }
   0xc   :  { %p329_p3 = scmp.ne.s32.totalorder %s32_s27, %s328_s6  ;;  %p334_p5 = scmp.lt.s32.totalorder %s328_s6, %s328_s6 }
   0xe   :  { %p335_p6 = por %p334_p5, %p333_p4 }
  0x10   :  { %p336_p7 = pnand %p335_p6, %p329_p3 }
  0x12   :  { %339 = shalt.err (!%p336_p7)
}
  0x13   :  { %s389_s12 = smov 128   ;;  %s390_s13 = smov 8  }
  0x14   :  { %37 = dma.hbm_to_vmem [thread:$0]  %s494_s1, 256, %s32_s27, [#allocation6], %s389_s12, %s389_s12, %s390_s13  }
  0x15   :  { %s391_s16 = smov [#allocation3]   ;;  %s392_s18 = smov [#allocation7]  }
  0x16   :  { %s22_s17 = sshll.u32 %s391_s16, 4  ;;  %s45_s19 = sshll.u32 %s392_s18, 4  ;;  %s23_s17 = int_to_ptr.vmem [resolvable:$true] %s22_s17  ;;  %s46_s19 = int_to_ptr.vmem [resolvable:$true] %s45_s19 }
  0x17   :  { %s340_s22 = scalar_lea.hbm %s493_s0, 128 }
  0x18   :  { %p341_p8 = scmp.ne.s32.totalorder %s493_s0, %s340_s22  ;;  %p344_p9 = scmp.lt.u32.totalorder %s340_s22, %s493_s0 }
  0x1a   :  { %p346_p10 = pnand %p344_p9, %p341_p8 }
  0x1c   :  { %349 = shalt.err (!%p346_p10)
}
  0x1d   :  { %s350_s1 = scalar_lea.vmem %s23_s17, 128  ;;  %p355_p12 = scmp.lt.s32.totalorder %s23_s17, %s23_s17 }
  0x1e   :  { %p351_p11 = scmp.ne.s32.totalorder %s23_s17, %s350_s1  ;;  %p356_p13 = scmp.lt.s32.totalorder %s350_s1, %s350_s1 }
  0x20   :  { %p357_p0 = por %p356_p13, %p355_p12 }
  0x22   :  { %p358_p1 = pnand %p357_p0, %p351_p11 }
  0x24   :  { %361 = shalt.err (!%p358_p1)
}
  0x25   :  { %25 = dma.hbm_to_vmem [thread:$0]  %s493_s0, 128, %s23_s17, [#allocation4]  }
  0x26   :  { %s362_s8 = scalar_lea.hbm %s496_s3, 512 }
  0x27   :  { %p363_p2 = scmp.ne.s32.totalorder %s496_s3, %s362_s8  ;;  %p366_p3 = scmp.lt.u32.totalorder %s362_s8, %s496_s3 }
  0x29   :  { %p368_p4 = pnand %p366_p3, %p363_p2 }
  0x2b   :  { %371 = shalt.err (!%p368_p4)
}
  0x2c   :  { %s372_s14 = scalar_lea.vmem %s46_s19, 512  ;;  %p377_p6 = scmp.lt.s32.totalorder %s46_s19, %s46_s19 }
  0x2d   :  { %p373_p5 = scmp.ne.s32.totalorder %s46_s19, %s372_s14  ;;  %p378_p7 = scmp.lt.s32.totalorder %s372_s14, %s372_s14 }
  0x2f   :  { %p379_p8 = por %p378_p7, %p377_p6 }
  0x31   :  { %p380_p9 = pnand %p379_p8, %p373_p5 }
  0x33   :  { %383 = shalt.err (!%p380_p9)
}
  0x34   :  { %51 = dma.hbm_to_vmem [thread:$0]  %s496_s3, 512, %s46_s19, [#allocation6], %s389_s12, %s389_s12, %s390_s13  }
  0x35   :  { %384 = dma.done.wait [#allocation4], 128  }
  0x36   :  { %385 = vsyncadd [#allocation4], 4294967168 }
  0x37   :  { %386 = dma.done.wait [#allocation6], 768  }
  0x38   :  { %387 = vsyncadd [#allocation6], 4294966528  ;;  %v393_v1 = vmov 0.0|0.0   ;;  %vm394_vm0 = vmmov 0   ;;  %v395_v2 = vmov 0.0   ;;  %v67_v3 = vld [vmem:[#allocation5] sm:$0xff] }
  0x39   :  { %297 = vmatprep.subr.bf16.mxu0 %v393_v1  ;;  %283 = vmatprep.mubr.msk.f32.mxu0 %vm394_vm0, %v395_v2  ;;  %v68_v4 = vld [vmem:[#allocation5 + $0x8] sm:$0xff]  ;;  %v73_v6 = vld [vmem:[#allocation3] sm:$0xff]  ;;  %vm81_vm1 = vcmask 130048   ;;  %v69_v7 = vld [vmem:[#allocation7] sm:$0xff]  ;;  %vm163_vm2 = vcmask 261120   ;;  %vm257_vm3 = vcmask 7168  }
  0x3a   :  { %300 = vmatprep.subr.bf16.mxu1 %v393_v1  ;;  %294 = vmatprep.mubr.msk.f32.mxu1 %vm394_vm0, %v395_v2  ;;  %v298_v5 = vpack.c.bf16 %v68_v4, %v67_v3  ;;  %v70_v8 = vld [vmem:[#allocation7 + $0x8] sm:$0xff]  ;;  %v71_v9 = vld [vmem:[#allocation7 + $0x10] sm:$0xff]  ;;  %v72_v11 = vld [vmem:[#allocation7 + $0x18] sm:$0xff] }
  0x3b   :  { %v301_v10 = vpack.c.bf16 %v70_v8, %v69_v7  ;;  %v304_v12 = vpack.c.bf16 %v72_v11, %v71_v9  ;;  %v265_v13 = vld [vmem:[%s495_s2] ss:$0 sm:$0xff] }
  0x3c   :  { %299 = vmatpush3.bf16.msra.mxu0 %v298_v5  ;;  %v267_v18 = vld [vmem:[%s497_s4] ss:$0 sm:$0xff] }
  0x3d   :  { %302 = vmatpush3.bf16.msra.mxu1 %v301_v10  ;;  %v269_v22 = vld [vmem:[%s498_s5] ss:$0 sm:$0xff] }
  0x3e   :  { %303 = vmatprep.subr.bf16.mxu1 %v393_v1  ;;  %v270_v26 = vld [vmem:[#allocation2] ss:$0 sm:$0xff] }
  0x3f   :  { %284 = vmatmul.mubr.msk.f32.vlgmr.msra.gmra.mrb[0].mxu0 %vm81_vm1, %v73_v6 }
  0x41   :  { %305 = vmatpush3.bf16.msra.mxu1 %v304_v12 }
 0x112   :  { %v151_v14 = vpop.f32.mrb[0].mxu0 }
 0x113   :  { %v152_v15 = vadd.f32 %v265_v13, %v151_v14  ;;  %v285_v16 = vpop.f32.mrb[1].mxu0 }
 0x115   :  { %314 = vtanh.f32 %v152_v15 }
 0x11f   :  { %v315_v17 = vpop.eup %314 }
 0x120   :  { %295 = vmatmul.mubr.msk.f32.vlgmr.msra.gmra.mrb[0].mxu1 %vm163_vm2, %v315_v17 }
 0x1f3   :  { %v233_v19 = vpop.f32.mrb[0].mxu1 }
 0x1f4   :  { %v234_v20 = vadd.f32 %v267_v18, %v233_v19  ;;  %v296_v21 = vpop.f32.mrb[1].mxu1 }
 0x1f6   :  { %316 = vtanh.f32 %v234_v20 }
 0x200   :  { %v317_v23 = vpop.eup %316 }
 0x201   :  { %v245_v24 = vmul.f32 %v317_v23, %v269_v22 }
 0x203   :  { %v246_v25 = vsel %vm163_vm2, %v245_v24, 0.0 }
 0x204   :  { %247 = vadd.xlane.f32.xlu0 %v246_v25 }
 0x291   :  { %v248_v27 = vpop.xlane.xlu0 %247 }
 0x292   :  { %v256_v28 = vadd.f32 %v270_v26, %v248_v27 }
 0x294   :  { %258 = vst.msk [vmem:[%s500_s7] sm:$0xff] %vm257_vm3, %v256_v28 }
 0x295   :  { %263 = vsyncpa [#allocation4], 1 }
 0x296   :  { %264 = vsyncpa [#allocation6], 1 }

</bundles_post_ra>
